<compile_context>
chip_gen: v7x
topology: tpu7x:2x2x1
jax: 0.10.0
libtpu: 0.0.40
codegen_flags: <defaults>
</compile_context>

<pallas_src>
import functools

import jax
import jax.numpy as jnp
from jax.experimental import pallas as pl
from jax.experimental.pallas import tpu as pltpu


def _round_up(x, m):
    return ((x + m - 1) // m) * m


def _classifier_kernel(inv_sigma_ref, x_ref, w_ref, b_ref, o_ref):
    # inv_sigma_ref: SMEM (1,1) f32   precomputed 1/sigma
    # x_ref:         (TB, F)  f32     batch tile (native dtype, cast here)
    # w_ref:         (F, C)   bf16    pre-transposed weight (grid-resident)
    # b_ref:         (1, C)   f32     bias (grid-resident)
    # o_ref:         (TB, C)  f32     unpadded output tile
    x = x_ref[...].astype(jnp.bfloat16)                      # cast in VMEM, no HBM pass
    acc = jnp.dot(x, w_ref[...], preferred_element_type=jnp.float32)  # (TB, C) f32
    o_ref[...] = acc * inv_sigma_ref[0, 0] + b_ref[...]      # fused scale + bias epilogue


@functools.partial(jax.jit, static_argnames=("tb_max", "force_pallas"))
def classifier_forward(seq, weight, bias, u, tb_max=1024, force_pallas=False):
    """seq: (B, ft_in), weight: (nb_classes, ft_in) [PyTorch layout],
    bias: (nb_classes,), u: (nb_classes,) power-iteration vector.
    Returns (logits (B, nb_classes) f32, updated u)."""
    eps = 1e-12

    def _l2norm(v):
        return v / jnp.maximum(jnp.linalg.norm(v), eps)

    # One power-iteration step (torch spectral_norm, n_power_iterations=1).
    w32 = weight.astype(jnp.float32)
    v = _l2norm(w32.T @ u.astype(jnp.float32))   # (ft_in,)
    wv = w32 @ v                                 # (nb_classes,)  computed once
    u_new = _l2norm(wv)
    sigma = u_new @ wv                           # scalar spectral-norm estimate
    inv_sigma = 1.0 / jnp.maximum(sigma, eps)    # eps guard against zero weight

    B, F = seq.shape
    C = weight.shape[0]

    # Small-problem fast path: at tiny shapes the pallas_call fixed cost plus the
    # surrounding tiny XLA ops dominate — let XLA fuse a plain matmul instead.
    if not force_pallas and B * F < (1 << 18):
        logits = seq.astype(jnp.float32) @ (w32 * inv_sigma).T + bias.astype(jnp.float32)
        return logits, u_new

    # Batch tile: as large as useful, multiple of 8 sublanes, and capped at
    # ~ceil(B/2) for large B so the parallel grid has >=2 steps (v7x megacore).
    tb = _round_up(B, 8)
    if B >= 256:
        tb = min(tb, _round_up(-(-B // 2), 8))
    TB = min(tb_max, tb)
    grid = (pl.cdiv(B, TB),)                     # ragged last tile handled by Pallas

    w_t = weight.astype(jnp.bfloat16).T          # (F, C) — tiny one-time copy
    b2 = bias.astype(jnp.float32).reshape(1, C)
    inv_sigma_arr = jnp.reshape(inv_sigma, (1, 1)).astype(jnp.float32)

    out = pl.pallas_call(
        _classifier_kernel,
        out_shape=jax.ShapeDtypeStruct((B, C), jnp.float32),
        grid=grid,
        in_specs=[
            pl.BlockSpec(memory_space=pltpu.MemorySpace.SMEM),   # 1/sigma scalar
            pl.BlockSpec((TB, F), lambda i: (i, 0)),             # seq tile (pipelined)
            pl.BlockSpec((F, C), lambda i: (0, 0)),              # weight (resident)
            pl.BlockSpec((1, C), lambda i: (0, 0)),              # bias   (resident)
        ],
        out_specs=pl.BlockSpec((TB, C), lambda i: (i, 0)),
        compiler_params=pltpu.CompilerParams(
            dimension_semantics=("parallel",)),
        cost_estimate=pl.CostEstimate(
            flops=2 * B * F * C,
            transcendentals=0,
            bytes_accessed=B * F * 4 + F * C * 2 + B * C * 4 + C * 4,
        ),
    )(inv_sigma_arr, seq, w_t, b2)

    return out, u_new


def _reference(seq, weight, bias, u0):
    """Pure-JAX reference with the same spectral-norm math and the same bf16
    rounding of seq/weight the kernel applies (f32 accumulation)."""
    eps = 1e-12
    v = weight.T @ u0
    v = v / jnp.maximum(jnp.linalg.norm(v), eps)
    wv = weight @ v
    u_ref = wv / jnp.maximum(jnp.linalg.norm(wv), eps)
    sigma = u_ref @ wv
    inv_sigma = 1.0 / jnp.maximum(sigma, eps)
    seq_bf = seq.astype(jnp.bfloat16).astype(jnp.float32)
    w_bf = weight.astype(jnp.bfloat16).astype(jnp.float32)
    ref = (seq_bf @ w_bf.T) * inv_sigma + bias
    return ref, u_ref


if __name__ == "__main__":
    # Shapes consistent with the module: ft_in=32, nb_classes=8.
    ft_in, nb_classes = 32, 8

    key = jax.random.PRNGKey(0)
    k_x, k_w, k_b, k_u, k_x2 = jax.random.split(key, 5)

    # Deterministic "nn.Linear"-style init (uniform in +/- 1/sqrt(ft_in)).
    bound = 1.0 / (ft_in ** 0.5)
    weight = jax.random.uniform(k_w, (nb_classes, ft_in), minval=-bound, maxval=bound)
    bias = jax.random.uniform(k_b, (nb_classes,), minval=-bound, maxval=bound)
    u0 = jax.random.normal(k_u, (nb_classes,))
    u0 = u0 / jnp.maximum(jnp.linalg.norm(u0), 1e-12)

    # --- Test 1: small batch (module-native scale), Pallas path forced. ---
    batch = 16
    seq = jax.random.normal(k_x, (batch, ft_in), dtype=jnp.float32)
    out, u_new = classifier_forward(seq, weight, bias, u0, force_pallas=True)
    jax.block_until_ready(out)

    ref, u_ref = _reference(seq, weight, bias, u0)
    assert out.shape == (batch, nb_classes)
    assert jnp.allclose(out, ref, atol=2e-4, rtol=2e-4), "mismatch vs reference (small)"
    assert jnp.allclose(u_new, u_ref, atol=1e-5, rtol=1e-5), "u mismatch"

    # --- Test 2: larger ragged batch (multi-step parallel grid + boundary tile). ---
    batch2 = 1100
    seq2 = jax.random.normal(k_x2, (batch2, ft_in), dtype=jnp.float32)
    out2, _ = classifier_forward(seq2, weight, bias, u0, force_pallas=True)
    jax.block_until_ready(out2)

    ref2, _ = _reference(seq2, weight, bias, u0)
    assert out2.shape == (batch2, nb_classes)
    assert jnp.allclose(out2, ref2, atol=2e-4, rtol=2e-4), "mismatch vs reference (large)"

    print("KERNEL_OK")
</pallas_src>

<mosaic_0001>
module attributes {stable_mosaic.version = 11 : i64} {
  func.func @_classifier_kernel(%arg0: i32, %arg1: memref<1x1xf32, #tpu.memory_space<smem>>, %arg2: memref<16x32xf32, #tpu.memory_space<vmem>>, %arg3: memref<32x8xbf16, #tpu.memory_space<vmem>>, %arg4: memref<1x8xf32, #tpu.memory_space<vmem>>, %arg5: memref<16x8xf32, #tpu.memory_space<vmem>>) attributes {dimension_semantics = [#tpu.dimension_semantics<parallel>], iteration_bounds = array<i64: 1>, scalar_prefetch = 0 : i64, scratch_operands = 0 : i64, tpu.core_type = #tpu.core_type<tc>, window_params = [{transform_indices = @transform_0, window_bounds = array<i64: 1, 1>}, {transform_indices = @transform_1, window_bounds = array<i64: 16, 32>}, {pipeline_mode = #tpu.pipeline_mode<synchronous>, transform_indices = @transform_2, window_bounds = array<i64: 32, 8>}, {pipeline_mode = #tpu.pipeline_mode<synchronous>, transform_indices = @transform_3, window_bounds = array<i64: 1, 8>}, {transform_indices = @transform_4, window_bounds = array<i64: 16, 8>}]} {
    %c0 = arith.constant 0 : index
    %c0_0 = arith.constant 0 : index
    %0 = vector.load %arg2[%c0, %c0_0] : memref<16x32xf32, #tpu.memory_space<vmem>>, vector<16x32xf32>
    %1 = arith.truncf %0 : vector<16x32xf32> to vector<16x32xbf16>
    %c0_1 = arith.constant 0 : index
    %c0_2 = arith.constant 0 : index
    %2 = vector.load %arg3[%c0_1, %c0_2] : memref<32x8xbf16, #tpu.memory_space<vmem>>, vector<32x8xbf16>
    %cst = arith.constant dense<0.000000e+00> : vector<16x8xf32>
    %3 = tpu.matmul %1, %2, %cst {dimension_numbers = #tpu.dot_dimension_numbers<[1], [0], [0], [1], [0, 0, 1, 1], [], []>} : vector<16x32xbf16>, vector<32x8xbf16>, vector<16x8xf32> -> vector<16x8xf32>
    %c0_3 = arith.constant 0 : index
    %c0_4 = arith.constant 0 : index
    %4 = memref.load %arg1[%c0_3, %c0_4] : memref<1x1xf32, #tpu.memory_space<smem>>
    %5 = vector.broadcast %4 : f32 to vector<16x8xf32>
    %6 = arith.mulf %3, %5 : vector<16x8xf32>
    %c0_5 = arith.constant 0 : index
    %c0_6 = arith.constant 0 : index
    %7 = vector.load %arg4[%c0_5, %c0_6] : memref<1x8xf32, #tpu.memory_space<vmem>>, vector<1x8xf32>
    %8 = vector.broadcast %7 : vector<1x8xf32> to vector<16x8xf32>
    %9 = arith.addf %6, %8 : vector<16x8xf32>
    %c0_7 = arith.constant 0 : index
    %c0_8 = arith.constant 0 : index
    %10 = vector.load %arg5[%c0_7, %c0_8] : memref<16x8xf32, #tpu.memory_space<vmem>>, vector<16x8xf32>
    tpu.vector_store %arg5[%c0_7, %c0_8], %9 {strides = array<i32>} : memref<16x8xf32, #tpu.memory_space<vmem>>, vector<16x8xf32>,
    return
  }
  func.func @transform_0(%arg0: i32) -> (i32, i32) {
    %c0_i32 = arith.constant 0 : i32
    %c0_i32_0 = arith.constant 0 : i32
    %c0_i32_1 = arith.constant 0 : i32
    return %c0_i32, %c0_i32_0 : i32, i32
  }
  func.func @transform_1(%arg0: i32) -> (i32, i32) {
    %c0_i32 = arith.constant 0 : i32
    %c0_i32_0 = arith.constant 0 : i32
    return %arg0, %c0_i32 : i32, i32
  }
  func.func @transform_2(%arg0: i32) -> (i32, i32) {
    %c0_i32 = arith.constant 0 : i32
    %c0_i32_0 = arith.constant 0 : i32
    %c0_i32_1 = arith.constant 0 : i32
    return %c0_i32, %c0_i32_0 : i32, i32
  }
  func.func @transform_3(%arg0: i32) -> (i32, i32) {
    %c0_i32 = arith.constant 0 : i32
    %c0_i32_0 = arith.constant 0 : i32
    %c0_i32_1 = arith.constant 0 : i32
    return %c0_i32, %c0_i32_0 : i32, i32
  }
  func.func @transform_4(%arg0: i32) -> (i32, i32) {
    %c0_i32 = arith.constant 0 : i32
    %c0_i32_0 = arith.constant 0 : i32
    return %arg0, %c0_i32 : i32, i32
  }
}

</mosaic_0001>

<bundles_post_ra>
// kernel: classifier_forward.1
= control target key start
LH: loop header
LB: loop body
LE: loop exit
PB: predicated region body
PF: predicated region fallthrough
CT: control target
= control target key end

     0   :  { %v122_v0 = vmov 0.0   ;;  %vm123_vm0 = vmmov 0   ;;  %vm38_vm1 = vcmask 261120   ;;  %vm96_vm2 = vcmask 64512   ;;  %s173_s2 = inlined_call_operand.vmem [shape: bf16[32,8], index: 2, kind: input, shape index: {}]   ;;  %s174_s1 = inlined_call_operand.vmem [shape: f32[16,32], index: 1, kind: input, shape index: {}]   ;;  %s175_s0 = inlined_call_operand.<no memory space> [shape: f32[1,1], index: 0, kind: input, shape index: {}]   ;;  %s176_s3 = inlined_call_operand.vmem [shape: f32[1,8], index: 3, kind: input, shape index: {}]   ;;  %s177_s4 = inlined_call_operand.vmem [shape: f32[16,8], index: 4, kind: output, shape index: {}]  }
   0x1   :  { %110 = vmatprep.subr.bf16.mxu0 %v122_v0  ;;  %v120_v1 = vld [vmem:[%s173_s2] sm:$0xff]   ;;  %114 = vmatprep.mubr.msk.bf16.mxu0 %vm123_vm0, %v122_v0  ;;  %v121_v2 = vld [vmem:[%s173_s2 + $0x8] sm:$0xff]   ;;  %v84_v6 = vstv %s175_s0 }
   0x2   :  { %111 = vmatpush3.bf16.msra.mxu0 %v120_v1  ;;  %v19_v3 = vld [vmem:[%s174_s1] sm:$0xff]  ;;  %v20_v4 = vld [vmem:[%s174_s1 + $0x8] sm:$0xff] }
   0x3   :  { %112 = vmatprep.subr.bf16.mxu0 %v122_v0  ;;  %v21_v5 = vpack.c.bf16 %v20_v4, %v19_v3  ;;  %v106_v8 = vld [vmem:[%s176_s3] ss:$0 sm:$0xff] }
   0x6   :  { %113 = vmatpush3.bf16.msra.mxu0 %v121_v2 }
   0x9   :  { %115 = vmatmul.mubr.msk.bf16.vlgmr.msra.gmra.mrb[0].mxu0 %vm38_vm1, %v21_v5 }
  0xdc   :  { %v76_v7 = vpop.f32.mrb[0].mxu0 }
  0xdd   :  { %v85_v9 = vmul.f32 %v84_v6, %v76_v7  ;;  %v116_v10 = vpop.f32.mrb[1].mxu0 }
  0xde   :  { %v79_v11 = vpop.f32.mrb[2].mxu0 }
  0xdf   :  { %v94_v12 = vadd.f32 %v106_v8, %v85_v9  ;;  %v86_v13 = vmul.f32 %v84_v6, %v79_v11  ;;  %v117_v14 = vpop.f32.mrb[3].mxu0 }
  0xe1   :  { %97 = vst.msk [vmem:[%s177_s4] sm:$0xff] %vm96_vm2, %v94_v12  ;;  %v95_v15 = vadd.f32 %v106_v8, %v86_v13 }
  0xe3   :  { %98 = vst.msk [vmem:[%s177_s4 + $0x8] sm:$0xff] %vm96_vm2, %v95_v15 }

</bundles_post_ra>
